<compile_context>
chip_gen: v7x
topology: tpu7x:2x2x1
jax: 0.10.0
libtpu: 0.0.40
codegen_flags: <defaults>
</compile_context>

<pallas_src>
import functools

import jax
import jax.numpy as jnp
from jax.experimental import pallas as pl
from jax.experimental.pallas import tpu as pltpu


# Explicit scoped-VMEM limit that is safe on v5e / v6e / v7x.
_VMEM_LIMIT = 32 * 1024 * 1024


def _pick_hw_tile(hw, cap=2048):
    """Tile for the flattened spatial axis: full axis if small, otherwise the
    largest 128-aligned divisor <= cap (keeps per-buffer blocks far below the
    per-generation VMEM limits while staying lane-dense)."""
    if hw <= cap:
        return hw
    start = cap - (cap % 128)
    for t in range(start, 0, -128):
        if hw % t == 0:
            return t
    return hw  # fallback: single block


# ---------------------------------------------------------------------------
# BatchNorm2d (training mode: batch statistics, biased variance), affine.
# ---------------------------------------------------------------------------
def _bn_stats_kernel(x_ref, sum_ref, sq_ref):
    # sum/sq output blocks are resident across the last ("arbitrary") hw axis.
    @pl.when(pl.program_id(1) == 0)
    def _():
        sum_ref[...] = jnp.zeros_like(sum_ref)
        sq_ref[...] = jnp.zeros_like(sq_ref)

    x = x_ref[...]                                        # (C, hw_tile)
    sum_ref[...] += jnp.sum(x, axis=1, keepdims=True)     # (C, 1)
    sq_ref[...] += jnp.sum(x * x, axis=1, keepdims=True)  # (C, 1)


def _bn_apply_kernel(x_ref, scale_ref, shift_ref, o_ref):
    # Pre-fused per-channel affine: (x - mean)*inv*w + b == x*scale + shift.
    o_ref[...] = x_ref[...] * scale_ref[...] + shift_ref[...]


def batch_norm2d(x, weight, bias, eps=1e-5):
    N, C, H, W = x.shape
    HW = H * W
    x3 = x.reshape(N, C, HW)          # pure reshape: no HBM transpose traffic
    hw_tile = _pick_hw_tile(HW)
    grid = (N, HW // hw_tile)

    # Pass 1: per-(n, channel) partial sums, accumulated in-kernel over hw.
    psum, psq = pl.pallas_call(
        _bn_stats_kernel,
        out_shape=(jax.ShapeDtypeStruct((N, C, 1), jnp.float32),
                   jax.ShapeDtypeStruct((N, C, 1), jnp.float32)),
        grid=grid,
        in_specs=[pl.BlockSpec((None, C, hw_tile), lambda n, t: (n, 0, t))],
        out_specs=(pl.BlockSpec((None, C, 1), lambda n, t: (n, 0, 0)),
                   pl.BlockSpec((None, C, 1), lambda n, t: (n, 0, 0))),
        compiler_params=pltpu.CompilerParams(
            dimension_semantics=("parallel", "arbitrary"),
            vmem_limit_bytes=_VMEM_LIMIT),
    )(x3)

    # Tiny (N, C) -> (C,) combine + scalar math; pre-fuse scale/shift once.
    m = float(N * HW)
    s = jnp.sum(psum, axis=(0, 2))
    sq = jnp.sum(psq, axis=(0, 2))
    mean = s / m
    var = jnp.maximum(sq / m - mean * mean, 0.0)
    inv = jax.lax.rsqrt(var + eps)
    scale = (weight * inv).astype(x.dtype).reshape(C, 1)
    shift = (bias - mean * weight * inv).astype(x.dtype).reshape(C, 1)

    # Pass 2: elementwise normalize; fully parallel grid (v7x uses both TCs).
    # scale/shift index maps ignore the grid -> DMA'd once, not per tile.
    out3 = pl.pallas_call(
        _bn_apply_kernel,
        out_shape=jax.ShapeDtypeStruct((N, C, HW), x.dtype),
        grid=grid,
        in_specs=[pl.BlockSpec((None, C, hw_tile), lambda n, t: (n, 0, t)),
                  pl.BlockSpec((C, 1), lambda n, t: (0, 0)),
                  pl.BlockSpec((C, 1), lambda n, t: (0, 0))],
        out_specs=pl.BlockSpec((None, C, hw_tile), lambda n, t: (n, 0, t)),
        compiler_params=pltpu.CompilerParams(
            dimension_semantics=("parallel", "parallel"),
            vmem_limit_bytes=_VMEM_LIMIT),
    )(x3, scale, shift)
    # TODO(synk): running_mean / running_var buffer updates (training side
    # effect) are not part of the returned tensor and are not reproduced.
    return out3.reshape(N, C, H, W)


# ---------------------------------------------------------------------------
# Local response normalization family (lrnc / lrns / lrnb).
# ---------------------------------------------------------------------------
def _band(n, pad, dtype):
    """(n, n) symmetric band matrix: 1 where |i - j| <= pad (built in-kernel)."""
    r = jax.lax.broadcasted_iota(jnp.int32, (n, n), 0)
    c = jax.lax.broadcasted_iota(jnp.int32, (n, n), 1)
    return (jnp.abs(r - c) <= pad).astype(dtype)


def _lrn_kernel(x_ref, o_ref, *, cpad, spad, alpha, beta, k, count, W):
    x = x_ref[...]                            # (C, H*W): lane-dense layout
    C, HW = x.shape
    s = x * x

    if cpad is not None:
        # Channel window sum as a single tiny (C, C) x (C, HW) band matmul:
        # contracts the sublane axis on the otherwise idle MXU, no transposes,
        # no sublane concatenates and no padded (C + 2*cpad) temporary.
        s = jnp.dot(_band(C, cpad, s.dtype), s,
                    preferred_element_type=jnp.float32)

    if spad is not None:
        # Separable (2*spad+1)-tap spatial window on the flattened H*W lane
        # axis: pltpu.roll lane shifts + iota edge masks (zero padding).
        col = jax.lax.broadcasted_iota(jnp.int32, (C, HW), 1)
        w_idx = col % W
        # W-direction window.
        acc = s
        for d in range(1, spad + 1):
            left = pltpu.roll(s, shift=d, axis=1)           # value from p - d
            right = pltpu.roll(s, shift=HW - d, axis=1)     # value from p + d
            acc = acc + jnp.where(w_idx >= d, left, 0.0)
            acc = acc + jnp.where(w_idx < W - d, right, 0.0)
        s = acc
        # H-direction window (whole-row shifts).
        acc = s
        for d in range(1, spad + 1):
            up = pltpu.roll(s, shift=d * W, axis=1)         # value from p - d*W
            down = pltpu.roll(s, shift=HW - d * W, axis=1)  # value from p + d*W
            acc = acc + jnp.where(col >= d * W, up, 0.0)
            acc = acc + jnp.where(col < HW - d * W, down, 0.0)
        s = acc

    # x / (k + alpha * avg)**beta  ==  x * exp(-beta * log(base)); base >= k > 0.
    base = k + (alpha / count) * s
    o_ref[...] = x * jnp.exp(-beta * jnp.log(base))


def _lrn_call(x, *, cpad, spad, alpha, beta, k, count):
    N, C, H, W = x.shape
    HW = H * W
    x3 = x.reshape(N, C, HW)                  # lane-dense view, no transpose
    kern = functools.partial(_lrn_kernel, cpad=cpad, spad=spad, alpha=alpha,
                             beta=beta, k=k, count=count, W=W)
    # TODO(synk): for large N, pack several batch elements per block to
    # amortize per-grid-step overhead further (kept at 1 for small shapes).
    out3 = pl.pallas_call(
        kern,
        out_shape=jax.ShapeDtypeStruct((N, C, HW), x.dtype),
        grid=(N,),
        in_specs=[pl.BlockSpec((None, C, HW), lambda n: (n, 0, 0))],
        out_specs=pl.BlockSpec((None, C, HW), lambda n: (n, 0, 0)),
        compiler_params=pltpu.CompilerParams(
            dimension_semantics=("parallel",),
            vmem_limit_bytes=_VMEM_LIMIT),
    )(x3)
    return out3.reshape(N, C, H, W)


# ---------------------------------------------------------------------------
# Normalization module (forward only), mirroring the PyTorch dispatch logic.
# ---------------------------------------------------------------------------
class Normalization:
    def __init__(self, layer, norm_method, norm_position, in_channels, key):
        self.layer = layer
        self.norm_method = norm_method
        self.norm_position = norm_position
        self.in_channels = in_channels
        # Deterministic synthetic affine params for bn1 (in_channels) / bn2 (20).
        k1, k2, k3, k4 = jax.random.split(key, 4)
        self.bn_params = {
            '1': (1.0 + 0.1 * jax.random.normal(k1, (in_channels,), jnp.float32),
                  0.1 * jax.random.normal(k2, (in_channels,), jnp.float32)),
            '2': (1.0 + 0.1 * jax.random.normal(k3, (20,), jnp.float32),
                  0.1 * jax.random.normal(k4, (20,), jnp.float32)),
        }

    def _apply_method(self, x):
        m = self.norm_method
        if m == 'nn':
            return x  # nn.Identity
        if m == 'bn':
            w, b = self.bn_params[self.layer]
            return batch_norm2d(x, w, b, eps=1e-5)
        if m == 'lrnc':   # nn.LocalResponseNorm(5, alpha=0.001)
            return _lrn_call(x, cpad=2, spad=None, alpha=1e-3, beta=0.75,
                             k=1.0, count=5.0)
        if m == 'lrns':   # LRN(spatial_size=3, across_channel_spatial=False)
            return _lrn_call(x, cpad=None, spad=1, alpha=1.0, beta=0.75,
                             k=1.0, count=9.0)
        if m == 'lrnb':   # LRN(channel_size=5, spatial_size=3, across both)
            return _lrn_call(x, cpad=2, spad=1, alpha=1.0, beta=0.75,
                             k=1.0, count=45.0)
        # TODO(synk): 'ln'/'in'/'gn' wrappers in the source return a module
        # from forward() (taking no tensor); calling them with x fails in
        # PyTorch too, so they are not translated.
        raise NotImplementedError(f"norm_method {m!r} is not callable on a tensor")

    def __call__(self, x):
        apply_norm = (self.norm_position == 'both') or (self.norm_position == self.layer)
        return self._apply_method(x) if apply_norm else x


# ---------------------------------------------------------------------------
# Main: deterministic inputs, run kernels, sanity-check against jnp references.
# ---------------------------------------------------------------------------
if __name__ == "__main__":
    key = jax.random.PRNGKey(0)
    kx, kp = jax.random.split(key)
    N, C, H, W = 2, 4, 16, 16
    x = jax.random.normal(kx, (N, C, H, W), jnp.float32)

    def bn_ref(xv, w, b, eps=1e-5):
        mean = xv.mean(axis=(0, 2, 3), keepdims=True)
        var = ((xv - mean) ** 2).mean(axis=(0, 2, 3), keepdims=True)
        return ((xv - mean) * jax.lax.rsqrt(var + eps) * w.reshape(1, -1, 1, 1)
                + b.reshape(1, -1, 1, 1))

    def lrn_ref(xv, cpad, spad, alpha, count, beta=0.75, k=1.0):
        sq = xv * xv
        sp = jnp.pad(sq, ((0, 0), (cpad, cpad), (spad, spad), (spad, spad)))
        total = 0.0
        for dc in range(2 * cpad + 1):
            for dh in range(2 * spad + 1):
                for dw in range(2 * spad + 1):
                    total = total + sp[:, dc:dc + C, dh:dh + H, dw:dw + W]
        return xv / (k + alpha * total / count) ** beta

    results = {}
    for method in ('bn', 'lrnc', 'lrns', 'lrnb', 'nn'):
        norm = Normalization(layer='1', norm_method=method, norm_position='1',
                             in_channels=C, key=kp)
        y = jax.block_until_ready(norm(x))
        assert y.shape == x.shape and y.dtype == x.dtype
        results[method] = y

    w1, b1 = Normalization('1', 'bn', '1', C, kp).bn_params['1']
    assert jnp.allclose(results['bn'], bn_ref(x, w1, b1), atol=1e-4, rtol=1e-4)
    assert jnp.allclose(results['lrnc'], lrn_ref(x, 2, 0, 1e-3, 5.0),
                        atol=2e-4, rtol=2e-4)
    assert jnp.allclose(results['lrns'], lrn_ref(x, 0, 1, 1.0, 9.0),
                        atol=2e-4, rtol=2e-4)
    assert jnp.allclose(results['lrnb'], lrn_ref(x, 2, 1, 1.0, 45.0),
                        atol=2e-4, rtol=2e-4)
    assert jnp.allclose(results['nn'], x)

    print("KERNEL_OK")
</pallas_src>

<mosaic_0001>
module attributes {stable_mosaic.version = 11 : i64} {
  func.func @_bn_stats_kernel(%arg0: i32, %arg1: i32, %arg2: memref<1x4x256xf32, #tpu.memory_space<vmem>>, %arg3: memref<1x4x1xf32, #tpu.memory_space<vmem>>, %arg4: memref<1x4x1xf32, #tpu.memory_space<vmem>>) attributes {dimension_semantics = [#tpu.dimension_semantics<parallel>, #tpu.dimension_semantics<arbitrary>], iteration_bounds = array<i64: 2, 1>, scalar_prefetch = 0 : i64, scratch_operands = 0 : i64, tpu.core_type = #tpu.core_type<tc>, window_params = [{transform_indices = @transform_0, window_bounds = array<i64: 1, 4, 256>}, {transform_indices = @transform_1, window_bounds = array<i64: 1, 4, 1>}, {transform_indices = @transform_2, window_bounds = array<i64: 1, 4, 1>}]} {
    %c0_i32 = arith.constant 0 : i32
    %0 = arith.cmpi eq, %arg1, %c0_i32 : i32
    %1 = arith.extui %0 : i1 to i32
    %c0_i32_0 = arith.constant 0 : i32
    %2 = arith.cmpi ne, %1, %c0_i32_0 : i32
    scf.if %2 {
      %cst_16 = arith.constant 0.000000e+00 : f32
      %22 = vector.broadcast %cst_16 : f32 to vector<4x1xf32>
      %c0_17 = arith.constant 0 : index
      %c0_18 = arith.constant 0 : index
      %c0_19 = arith.constant 0 : index
      %23 = vector.load %arg3[%c0_17, %c0_18, %c0_19] : memref<1x4x1xf32, #tpu.memory_space<vmem>>, vector<1x4x1xf32>
      %24 = vector.shape_cast %23 : vector<1x4x1xf32> to vector<4x1xf32>
      %25 = vector.shape_cast %22 : vector<4x1xf32> to vector<1x4x1xf32>
      tpu.vector_store %arg3[%c0_17, %c0_18, %c0_19], %25 {strides = array<i32>} : memref<1x4x1xf32, #tpu.memory_space<vmem>>, vector<1x4x1xf32>,
      %cst_20 = arith.constant 0.000000e+00 : f32
      %26 = vector.broadcast %cst_20 : f32 to vector<4x1xf32>
      %c0_21 = arith.constant 0 : index
      %c0_22 = arith.constant 0 : index
      %c0_23 = arith.constant 0 : index
      %27 = vector.load %arg4[%c0_21, %c0_22, %c0_23] : memref<1x4x1xf32, #tpu.memory_space<vmem>>, vector<1x4x1xf32>
      %28 = vector.shape_cast %27 : vector<1x4x1xf32> to vector<4x1xf32>
      %29 = vector.shape_cast %26 : vector<4x1xf32> to vector<1x4x1xf32>
      tpu.vector_store %arg4[%c0_21, %c0_22, %c0_23], %29 {strides = array<i32>} : memref<1x4x1xf32, #tpu.memory_space<vmem>>, vector<1x4x1xf32>,
    } else {
    }
    %c0 = arith.constant 0 : index
    %c0_1 = arith.constant 0 : index
    %c0_2 = arith.constant 0 : index
    %3 = vector.load %arg2[%c0, %c0_1, %c0_2] : memref<1x4x256xf32, #tpu.memory_space<vmem>>, vector<1x4x256xf32>
    %4 = vector.shape_cast %3 : vector<1x4x256xf32> to vector<4x256xf32>
    %c0_3 = arith.constant 0 : index
    %c0_4 = arith.constant 0 : index
    %c0_5 = arith.constant 0 : index
    %5 = vector.load %arg3[%c0_3, %c0_4, %c0_5] : memref<1x4x1xf32, #tpu.memory_space<vmem>>, vector<1x4x1xf32>
    %6 = vector.shape_cast %5 : vector<1x4x1xf32> to vector<4x1xf32>
    %cst = arith.constant dense<0.000000e+00> : vector<4xf32>
    %7 = vector.multi_reduction <add>, %4, %cst [1] : vector<4x256xf32> to vector<4xf32>
    %8 = vector.shape_cast %7 : vector<4xf32> to vector<4x1xf32>
    %9 = arith.addf %6, %8 : vector<4x1xf32>
    %c0_6 = arith.constant 0 : index
    %c0_7 = arith.constant 0 : index
    %c0_8 = arith.constant 0 : index
    %10 = vector.load %arg3[%c0_6, %c0_7, %c0_8] : memref<1x4x1xf32, #tpu.memory_space<vmem>>, vector<1x4x1xf32>
    %11 = vector.shape_cast %10 : vector<1x4x1xf32> to vector<4x1xf32>
    %12 = vector.shape_cast %9 : vector<4x1xf32> to vector<1x4x1xf32>
    tpu.vector_store %arg3[%c0_6, %c0_7, %c0_8], %12 {strides = array<i32>} : memref<1x4x1xf32, #tpu.memory_space<vmem>>, vector<1x4x1xf32>,
    %c0_9 = arith.constant 0 : index
    %c0_10 = arith.constant 0 : index
    %c0_11 = arith.constant 0 : index
    %13 = vector.load %arg4[%c0_9, %c0_10, %c0_11] : memref<1x4x1xf32, #tpu.memory_space<vmem>>, vector<1x4x1xf32>
    %14 = vector.shape_cast %13 : vector<1x4x1xf32> to vector<4x1xf32>
    %15 = arith.mulf %4, %4 : vector<4x256xf32>
    %cst_12 = arith.constant dense<0.000000e+00> : vector<4xf32>
    %16 = vector.multi_reduction <add>, %15, %cst_12 [1] : vector<4x256xf32> to vector<4xf32>
    %17 = vector.shape_cast %16 : vector<4xf32> to vector<4x1xf32>
    %18 = arith.addf %14, %17 : vector<4x1xf32>
    %c0_13 = arith.constant 0 : index
    %c0_14 = arith.constant 0 : index
    %c0_15 = arith.constant 0 : index
    %19 = vector.load %arg4[%c0_13, %c0_14, %c0_15] : memref<1x4x1xf32, #tpu.memory_space<vmem>>, vector<1x4x1xf32>
    %20 = vector.shape_cast %19 : vector<1x4x1xf32> to vector<4x1xf32>
    %21 = vector.shape_cast %18 : vector<4x1xf32> to vector<1x4x1xf32>
    tpu.vector_store %arg4[%c0_13, %c0_14, %c0_15], %21 {strides = array<i32>} : memref<1x4x1xf32, #tpu.memory_space<vmem>>, vector<1x4x1xf32>,
    return
  }
  func.func @transform_0(%arg0: i32, %arg1: i32) -> (i32, i32, i32) {
    %c0_i32 = arith.constant 0 : i32
    %c0_i32_0 = arith.constant 0 : i32
    return %arg0, %c0_i32, %arg1 : i32, i32, i32
  }
  func.func @transform_1(%arg0: i32, %arg1: i32) -> (i32, i32, i32) {
    %c0_i32 = arith.constant 0 : i32
    %c0_i32_0 = arith.constant 0 : i32
    %c0_i32_1 = arith.constant 0 : i32
    return %arg0, %c0_i32, %c0_i32_0 : i32, i32, i32
  }
  func.func @transform_2(%arg0: i32, %arg1: i32) -> (i32, i32, i32) {
    %c0_i32 = arith.constant 0 : i32
    %c0_i32_0 = arith.constant 0 : i32
    %c0_i32_1 = arith.constant 0 : i32
    return %arg0, %c0_i32, %c0_i32_0 : i32, i32, i32
  }
}

</mosaic_0001>

<bundles_post_ra>
// kernel: tpu_custom_call.1
= control target key start
LH: loop header
LB: loop body
LE: loop exit
PB: predicated region body
PF: predicated region fallthrough
CT: control target
= control target key end

     0   :  { %8 = vsyncpa [#allocation3], 0  ;;  %s630_s0 = inlined_call_operand.hbm [shape: f32[2,4,256], index: 0, kind: input, shape index: {}]   ;;  %s631_s1 = inlined_call_operand.vmem [shape: f32[2,4,1], index: 1, kind: output, shape index: {0}]   ;;  %s632_s2 = inlined_call_operand.vmem [shape: f32[2,4,1], index: 2, kind: output, shape index: {1}]  }
   0x1   :  { %10 = vsyncpa [#allocation3 + $0x1], 0  ;;  %s498_s9 = smov 0   ;;  %s500_s10 = smov 0  }
   0x2   :  { %s502_s11 = smov 0   ;;  %s504_s12 = smov 0  }
   0x3   :  { %s506_s13 = smov 0   ;;  %s508_s14 = smov 0  }
   0x4 LB: > { %s328_s15 = sadd.s32 4294967295, %s479_s14   ;;  %s28_s16 = sadd.s32 1, %s475_s13  ;;  %s479_s14 = sphi %s508_s14, %s16_s14   ;;  %s475_s13 = sphi %s506_s13, %s642_s13   ;;  %s471_s12 = sphi %s504_s12, %s641_s12   ;;  %s467_s11 = sphi %s502_s11, %s640_s11   ;;  %s463_s10 = sphi %s500_s10, %s639_s10   ;;  %s459_s9 = sphi %s498_s9, %s638_s9  }
   0x5   : > { %p30_p0 = scmp.ge.s32.totalorder %s28_s16, 2  ;;  %s37_s17 = sadd.s32 1, %s467_s11 }
   0x6   : > { %p44_p1 = scmp.ne.s32.totalorder %s467_s11, %s463_s10  ;;  %p45_p2 = scmp.eq.s32.totalorder %s479_s14, 0 }
   0x7   : > { %s644_s16 = smov (%p30_p0, %s28_s16), 0  ;;  %p50_p4 = scmp.ne.s32.totalorder %s463_s10, %s459_s9 }
   0x8   : > { %p534_p3 = por %p45_p2, %p44_p1  ;;  %s32_s19 = ssub.s32 %s475_s13, %s644_s16 }
   0x9   : > { %p51_p5 = scmp.eq.s32.totalorder %s328_s15, 0  ;;  %p35_p6 = scmp.eq.s32.totalorder %s32_s19, 0 }
   0xa   : > { %p348_p8 = scmp.lt.s32.totalorder %s479_s14, 2  ;;  %s126_s22 = sand.u32 1, %s467_s11  }
   0xb   : > { %p541_p7 = por %p51_p5, %p50_p4  ;;  %s341_s23 = sshll.u32 %s475_s13, 7 }
   0xc   : > { %s547_s21 = scalar_select %p35_p6, %s467_s11, %s37_s17  }
   0xd   : > { %s332_s24 = sshll.u32 %s126_s22, 3  ;;  %s554_s27 = scalar_lea.hbm %s630_s0, %s341_s23 }
   0xe   : > { %s130_s28 = scalar_lea.vmem [#allocation2], %s332_s24  ;;  %p558_p9 = pnand %p348_p8, %p534_p3 }
   0xf   : > { %s140_s29 = sshll.u32 %s130_s28, 4  ;;  %s127_s3 = scalar_lea.sflag [#allocation3], %s126_s22  ;;  %s562_s29 = int_to_ptr.vmem [resolvable:$true] %s140_s29 }
  0x10   : > { %s399_s4 = scalar_lea.hbm %s554_s27, 128  ;;  %p401_p13 = pneg %p558_p9 }
  0x11   : > { %p400_p12 = scmp.ne.s32.totalorder %s554_s27, %s399_s4  ;;  %s404_s7 = scalar_lea.hbm %s630_s0, 256 }
  0x12   : > { %p405_p2 = scmp.lt.u32.totalorder %s554_s27, %s630_s0  ;;  %p406_p3 = scmp.lt.u32.totalorder %s404_s7, %s399_s4 }
  0x13   : > { %p402_p0 = pnand %p401_p13, %p400_p12  ;;  %p408_p5 = scmp.lt.u32.totalorder %s399_s4, %s554_s27 }
  0x14   : > { %p407_p4 = por %p406_p3, %p405_p2 }
  0x15   : > { %p403_p1 = pneg %p402_p0 }
  0x16   : > { %p409_p6 = por %p408_p5, %p407_p4 }
  0x18   : > { %p410_p8 = pnand %p409_p6, %p403_p1 }
  0x1a   : > { %413 = shalt.err (!%p410_p8)
}
  0x1b   : > { %s414_s15 = scalar_lea.vmem %s562_s29, 128  ;;  %s481_s17 = smov [#allocation2]  }
  0x1c   : > { %p415_p12 = scmp.ne.s32.totalorder %s562_s29, %s414_s15  ;;  %s419_s18 = sshll.u32 %s481_s17, 4  ;;  %s420_s18 = int_to_ptr.vmem [resolvable:$false] %s419_s18 }
  0x1d   : > { %s421_s19 = scalar_lea.vmem %s420_s18, 256  ;;  %p422_p11 = scmp.lt.s32.totalorder %s562_s29, %s420_s18 }
  0x1e   : > { %p417_p0 = pnand %p415_p12, %p401_p13  ;;  %p423_p2 = scmp.lt.s32.totalorder %s421_s19, %s414_s15 }
  0x20   : > { %p418_p10 = pneg %p417_p0  ;;  %p424_p3 = por %p423_p2, %p422_p11 }
  0x22   : > { %p425_p4 = pnand %p424_p3, %p418_p10 }
  0x24   : > { %428 = shalt.err (!%p425_p4)
}
  0x25   : > { %347 = dma.hbm_to_vmem [thread:$0]  (!%p558_p9), %s554_s27, 128, %s562_s29, %s127_s3  }
  0x26   : > { %p636_p1 = scmp.lt.s32.totalorder %s479_s14, 3  ;;  %p637_p5 = scmp.ge.s32.totalorder %s479_s14, 1 }
  0x28   : > { %p146_p13 = pnand %p637_p5, %p636_p1 }
  0x29   : > { %s151_s22 = sand.u32 (!%p146_p13), 1, %s463_s10  }
  0x2a   : > { %149 = sbr.rel (%p146_p13) target bundleno = 205 (0xcd), region = 24  ;;  %s336_s23 = sshll.u32 (!%p146_p13), %s151_s22, 3 }
  0x2b   : > { %s152_s24 = scalar_lea.sflag (!%p146_p13), [#allocation3], %s151_s22  ;;  %s155_s25 = scalar_lea.vmem (!%p146_p13), [#allocation2], %s336_s23 }
  0x31   : > { %454 = dma.done.wait (%p541_p7), %s152_s24, 128  }
  0x32   : > { %456 = vsyncadd (%p541_p7), %s152_s24, 4294967168  ;;  %p180_p10 = scmp.lt.s32.totalorder %s471_s12, 1  ;;  %vm192_vm0 = vcmask 3072   ;;  %vm200_vm1 = vcmask 1043456   ;;  %v482_v0 = vmov 0.0   ;;  %v195_v1 = vld [vmem:[%s155_s25] sm:$0xff] }
  0x33   : > { %v198_v2 = vcombine.high %v195_v1, %v195_v1  ;;  %v201_v3 = vsel %vm200_vm1, %v195_v1, 0.0  ;;  %v210_v4 = vmul.f32 %v195_v1, %v195_v1 }
  0x34   : > { %s646_s12 = smov (!%p180_p10, %s471_s12), 1 }
  0x35   : > { %s337_s26 = sshll.u32 %s646_s12, 2  ;;  %v202_v5 = vsel %vm200_vm1, %v198_v2, 0.0  ;;  %v212_v6 = vcombine.high %v210_v4, %v210_v4  ;;  %v214_v7 = vsel %vm200_vm1, %v210_v4, 0.0 }
  0x36   : > { %s183_s29 = scalar_lea.vmem %s631_s1, %s337_s26  ;;  %v203_v8 = vadd.f32 %v202_v5, %v201_v3  ;;  %s187_s30 = scalar_lea.vmem %s632_s2, %s337_s26 }
  0x37   : > { %193 = vst.msk [vmem:[%s183_s29] sm:$0xf] %vm192_vm0, %v482_v0  ;;  %v215_v9 = vsel %vm200_vm1, %v212_v6, 0.0  ;;  %194 = vst.msk [vmem:[%s187_s30] sm:$0xf] %vm192_vm0, %v482_v0 }
  0x38   : > { %204 = vadd.xlane.f32.xlu0 %v203_v8  ;;  %v216_v10 = vadd.f32 %v215_v9, %v214_v7 }
  0x3c   : > { %217 = vadd.xlane.f32.xlu0 %v216_v10 }
  0x3e   : > { %v196_v11 = vld [vmem:[%s183_s29] sm:$0xf] }
  0x3f   : > { %v209_v14 = vld [vmem:[%s187_s30] sm:$0xf] }
  0xc5   : > { %v205_v12 = vpop.xlane.xlu0 %204 }
  0xc6   : > { %v206_v13 = vadd.f32 %v205_v12, %v196_v11 }
  0xc8   : > { %208 = vst.msk [vmem:[%s183_s29] sm:$0xf] %vm192_vm0, %v206_v13 }
  0xc9   : > { %v218_v15 = vpop.xlane.xlu0 %217 }
  0xca   : > { %v219_v16 = vadd.f32 %v218_v15, %v209_v14 }
  0xcc   : > { %220 = vst.msk [vmem:[%s187_s30] sm:$0xf] %vm192_vm0, %v219_v16 }
  0xcd PF: > { %s16_s14 = sadd.s32 1, %s479_s14   ;;  %s638_s9 = smov %s463_s10 }
  0xce   : > { %p13_p7 = scmp.ge.s32.totalorder %s16_s14, 4   ;;  %s639_s10 = smov %s467_s11 }
  0xcf   : > { %s640_s11 = smov %s547_s21  ;;  %s641_s12 = smov %s475_s13 }
  0xd0   : > { %s642_s13 = smov %s644_s16  ;;  %15 = sbr.rel (!%p13_p7) target bundleno = 4 (0x4), region = 80 }
  0xd7   :  { %254 = vsyncpa [#allocation3], 1 }
  0xd8   :  { %256 = vsyncpa [#allocation3 + $0x1], 1 }

</bundles_post_ra>
